<compile_context>
chip_gen: v5e
topology: v5e:2x2
jax: 0.10.0
libtpu: 0.0.40
codegen_flags: <defaults>
</compile_context>

<pallas_src>
import functools

import jax
import jax.numpy as jnp
from jax.experimental import pallas as pl
from jax.experimental.pallas import tpu as pltpu


def tabm_mini_kernel(x_ref, scale_ref, w1_ref, b1_ref, w2_ref, b2_ref,
                     woutc_ref, boutc_ref, out_ref, *, k, d_out):
    x = x_ref[...]                                  # (tb, d_flat)
    scale = scale_ref[...]                          # (k, d_flat)
    tb, d_flat = x.shape

    # ScaleEnsemble, ensemble axis folded into rows: row ki*tb + b = x[b] * scale[ki]
    xs = (scale[:, None, :] * x[None, :, :]).reshape(k * tb, d_flat)

    # Shared backbone MLP (weights identical across ensemble members)
    h = jnp.dot(xs, w1_ref[...], preferred_element_type=jnp.float32) + b1_ref[...]
    h = jnp.maximum(h, 0.0)
    h = jnp.dot(h, w2_ref[...], preferred_element_type=jnp.float32) + b2_ref[...]
    h = jnp.maximum(h, 0.0)

    # NLinear head as one wide matmul: (k*tb, d_block) @ (d_block, k*d_out)
    o_all = jnp.dot(h, woutc_ref[...], preferred_element_type=jnp.float32)

    # Member ki lives in row block ki and column block ki -> pick the diagonal blocks
    parts = [o_all[ki * tb:(ki + 1) * tb, ki * d_out:(ki + 1) * d_out]
             for ki in range(k)]
    out_ref[...] = jnp.concatenate(parts, axis=1) + boutc_ref[...]   # (tb, k*d_out)


def tabm_mini_forward(x_flat, scale, w1, b1, w2, b2, wout, bout, *, batch_tile=512):
    B, d_flat = x_flat.shape
    k, d_block, d_out = wout.shape

    # One-time head repack: (k, d_block, d_out) -> (d_block, k*d_out); bias -> (1, k*d_out)
    wout_cat = jnp.transpose(wout, (1, 0, 2)).reshape(d_block, k * d_out)
    bout_cat = bout.reshape(1, k * d_out)

    # Batch tiling: keep weights resident, tile rows for large B (sublane-aligned).
    tb = batch_tile if (B > batch_tile and B % 8 == 0) else B
    grid = (pl.cdiv(B, tb),)

    kernel = functools.partial(tabm_mini_kernel, k=k, d_out=d_out)

    out_flat = pl.pallas_call(
        kernel,
        out_shape=jax.ShapeDtypeStruct((B, k * d_out), jnp.float32),
        grid=grid,
        in_specs=[
            pl.BlockSpec((tb, d_flat), lambda i: (i, 0)),            # x_flat (batch-tiled)
            pl.BlockSpec((k, d_flat), lambda i: (0, 0)),             # scale  (resident)
            pl.BlockSpec((d_flat, d_block), lambda i: (0, 0)),       # W1
            pl.BlockSpec((1, d_block), lambda i: (0, 0)),            # b1
            pl.BlockSpec((d_block, d_block), lambda i: (0, 0)),      # W2
            pl.BlockSpec((1, d_block), lambda i: (0, 0)),            # b2
            pl.BlockSpec((d_block, k * d_out), lambda i: (0, 0)),    # Wout (concatenated)
            pl.BlockSpec((1, k * d_out), lambda i: (0, 0)),          # bout (concatenated)
        ],
        out_specs=pl.BlockSpec((tb, k * d_out), lambda i: (i, 0)),   # lane-dense output
        compiler_params=pltpu.CompilerParams(dimension_semantics=("parallel",)),
    )(x_flat, scale, w1, b1, w2, b2, wout_cat, bout_cat)

    return out_flat.reshape(B, k, d_out)            # metadata reshape only, no transpose


def one_hot_encode(x_cat, cardinalities):
    # OneHotEncoding0d: one_hot(x, card+1)[..., :-1] per column, concatenated.
    parts = []
    for i, c in enumerate(cardinalities):
        parts.append(jax.nn.one_hot(x_cat[:, i], c + 1, dtype=jnp.float32)[:, :-1])
    return jnp.concatenate(parts, axis=-1)


def reference_forward(x_flat, scale, w1, b1, w2, b2, wout, bout):
    x = x_flat[:, None, :] * scale[None, :, :]
    h = jax.nn.relu(jnp.einsum('bkd,df->bkf', x, w1) + b1[0])
    h = jax.nn.relu(jnp.einsum('bkd,df->bkf', h, w2) + b2[0])
    return jnp.einsum('bkd,kdo->bko', h, wout) + bout[None, :, :]


if __name__ == "__main__":
    # Small config consistent with Model(arch_type='tabm-mini', num_embeddings=None)
    B = 8
    n_num = 6
    cat_cards = [3, 5]
    k = 4
    d_block = 32
    n_blocks = 2
    n_classes = 3
    d_flat = n_num + sum(cat_cards)
    d_out = n_classes

    key = jax.random.PRNGKey(0)
    ks = jax.random.split(key, 16)

    # --- deterministic parameter init (mirrors the torch init recipes) ---
    # ScaleEnsemble weight, overwritten by _init_first_adapter('random-signs', sections)
    sections = [1] * n_num + cat_cards
    cols = []
    for j, width in enumerate(sections):
        s = jax.random.bernoulli(jax.random.fold_in(ks[0], j), 0.5, (k, 1))
        s = s.astype(jnp.float32) * 2.0 - 1.0
        cols.append(jnp.broadcast_to(s, (k, width)))
    scale = jnp.concatenate(cols, axis=1)                       # (k, d_flat)

    def rsqrt_uniform(key, shape, d):
        bound = d ** -0.5
        return jax.random.uniform(key, shape, jnp.float32, -bound, bound)

    # MLP backbone: Linear(d_flat -> d_block), ReLU, Linear(d_block -> d_block), ReLU
    w1 = rsqrt_uniform(ks[1], (d_flat, d_block), d_flat)        # stored already transposed
    b1 = rsqrt_uniform(ks[2], (1, d_block), d_flat)
    w2 = rsqrt_uniform(ks[3], (d_block, d_block), d_block)
    b2 = rsqrt_uniform(ks[4], (1, d_block), d_block)
    # NLinear head: (k, d_block, d_out) weight, (k, d_out) bias, init with d = d_block
    wout = rsqrt_uniform(ks[5], (k, d_block, d_out), d_block)
    bout = rsqrt_uniform(ks[6], (k, d_out), d_block)

    # --- deterministic example inputs ---
    x_num = jax.random.normal(ks[7], (B, n_num), jnp.float32)
    x_cat = jnp.stack(
        [jax.random.randint(jax.random.fold_in(ks[8], i), (B,), 0, c)
         for i, c in enumerate(cat_cards)], axis=1).astype(jnp.int32)

    # Glue: numeric features pass through (num_module is None); cats -> one-hot
    x_flat = jnp.concatenate([x_num, one_hot_encode(x_cat, cat_cards)], axis=-1)

    out = tabm_mini_forward(x_flat, scale, w1, b1, w2, b2, wout, bout)
    out = jax.block_until_ready(out)

    ref = reference_forward(x_flat, scale, w1, b1, w2, b2, wout, bout)
    assert out.shape == (B, k, d_out), out.shape
    assert jnp.allclose(out, ref, atol=1e-3, rtol=1e-3), float(jnp.max(jnp.abs(out - ref)))

    print("KERNEL_OK")
</pallas_src>

<mosaic_0001>
module attributes {stable_mosaic.version = 11 : i64} {
  func.func @tabm_mini_kernel(%arg0: i32, %arg1: memref<8x14xf32, #tpu.memory_space<vmem>>, %arg2: memref<4x14xf32, #tpu.memory_space<vmem>>, %arg3: memref<14x32xf32, #tpu.memory_space<vmem>>, %arg4: memref<1x32xf32, #tpu.memory_space<vmem>>, %arg5: memref<32x32xf32, #tpu.memory_space<vmem>>, %arg6: memref<1x32xf32, #tpu.memory_space<vmem>>, %arg7: memref<32x12xf32, #tpu.memory_space<vmem>>, %arg8: memref<1x12xf32, #tpu.memory_space<vmem>>, %arg9: memref<8x12xf32, #tpu.memory_space<vmem>>) attributes {dimension_semantics = [#tpu.dimension_semantics<parallel>], iteration_bounds = array<i64: 1>, scalar_prefetch = 0 : i64, scratch_operands = 0 : i64, tpu.core_type = #tpu.core_type<tc>, window_params = [{transform_indices = @transform_0, window_bounds = array<i64: 8, 14>}, {pipeline_mode = #tpu.pipeline_mode<synchronous>, transform_indices = @transform_1, window_bounds = array<i64: 4, 14>}, {pipeline_mode = #tpu.pipeline_mode<synchronous>, transform_indices = @transform_2, window_bounds = array<i64: 14, 32>}, {pipeline_mode = #tpu.pipeline_mode<synchronous>, transform_indices = @transform_3, window_bounds = array<i64: 1, 32>}, {pipeline_mode = #tpu.pipeline_mode<synchronous>, transform_indices = @transform_4, window_bounds = array<i64: 32, 32>}, {pipeline_mode = #tpu.pipeline_mode<synchronous>, transform_indices = @transform_5, window_bounds = array<i64: 1, 32>}, {pipeline_mode = #tpu.pipeline_mode<synchronous>, transform_indices = @transform_6, window_bounds = array<i64: 32, 12>}, {pipeline_mode = #tpu.pipeline_mode<synchronous>, transform_indices = @transform_7, window_bounds = array<i64: 1, 12>}, {transform_indices = @transform_8, window_bounds = array<i64: 8, 12>}]} {
    %c0 = arith.constant 0 : index
    %c0_0 = arith.constant 0 : index
    %0 = vector.load %arg1[%c0, %c0_0] : memref<8x14xf32, #tpu.memory_space<vmem>>, vector<8x14xf32>
    %c0_1 = arith.constant 0 : index
    %c0_2 = arith.constant 0 : index
    %1 = vector.load %arg2[%c0_1, %c0_2] : memref<4x14xf32, #tpu.memory_space<vmem>>, vector<4x14xf32>
    %2 = vector.shape_cast %1 : vector<4x14xf32> to vector<4x1x14xf32>
    %3 = vector.shape_cast %0 : vector<8x14xf32> to vector<1x8x14xf32>
    %4 = vector.broadcast %2 : vector<4x1x14xf32> to vector<4x8x14xf32>
    %5 = vector.broadcast %3 : vector<1x8x14xf32> to vector<4x8x14xf32>
    %6 = arith.mulf %4, %5 : vector<4x8x14xf32>
    %7 = vector.shape_cast %6 : vector<4x8x14xf32> to vector<32x14xf32>
    %c0_3 = arith.constant 0 : index
    %c0_4 = arith.constant 0 : index
    %8 = vector.load %arg3[%c0_3, %c0_4] : memref<14x32xf32, #tpu.memory_space<vmem>>, vector<14x32xf32>
    %cst = arith.constant dense<0.000000e+00> : vector<32x32xf32>
    %9 = tpu.matmul %7, %8, %cst {dimension_numbers = #tpu.dot_dimension_numbers<[1], [0], [0], [1], [0, 0, 1, 1], [], []>} : vector<32x14xf32>, vector<14x32xf32>, vector<32x32xf32> -> vector<32x32xf32>
    %c0_5 = arith.constant 0 : index
    %c0_6 = arith.constant 0 : index
    %10 = vector.load %arg4[%c0_5, %c0_6] : memref<1x32xf32, #tpu.memory_space<vmem>>, vector<1x32xf32>
    %11 = vector.broadcast %10 : vector<1x32xf32> to vector<32x32xf32>
    %12 = arith.addf %9, %11 : vector<32x32xf32>
    %cst_7 = arith.constant 0.000000e+00 : f32
    %13 = vector.broadcast %cst_7 : f32 to vector<32x32xf32>
    %14 = arith.maximumf %12, %13 : vector<32x32xf32>
    %c0_8 = arith.constant 0 : index
    %c0_9 = arith.constant 0 : index
    %15 = vector.load %arg5[%c0_8, %c0_9] : memref<32x32xf32, #tpu.memory_space<vmem>>, vector<32x32xf32>
    %cst_10 = arith.constant dense<0.000000e+00> : vector<32x32xf32>
    %16 = tpu.matmul %14, %15, %cst_10 {dimension_numbers = #tpu.dot_dimension_numbers<[1], [0], [0], [1], [0, 0, 1, 1], [], []>} : vector<32x32xf32>, vector<32x32xf32>, vector<32x32xf32> -> vector<32x32xf32>
    %c0_11 = arith.constant 0 : index
    %c0_12 = arith.constant 0 : index
    %17 = vector.load %arg6[%c0_11, %c0_12] : memref<1x32xf32, #tpu.memory_space<vmem>>, vector<1x32xf32>
    %18 = vector.broadcast %17 : vector<1x32xf32> to vector<32x32xf32>
    %19 = arith.addf %16, %18 : vector<32x32xf32>
    %cst_13 = arith.constant 0.000000e+00 : f32
    %20 = vector.broadcast %cst_13 : f32 to vector<32x32xf32>
    %21 = arith.maximumf %19, %20 : vector<32x32xf32>
    %c0_14 = arith.constant 0 : index
    %c0_15 = arith.constant 0 : index
    %22 = vector.load %arg7[%c0_14, %c0_15] : memref<32x12xf32, #tpu.memory_space<vmem>>, vector<32x12xf32>
    %cst_16 = arith.constant dense<0.000000e+00> : vector<32x12xf32>
    %23 = tpu.matmul %21, %22, %cst_16 {dimension_numbers = #tpu.dot_dimension_numbers<[1], [0], [0], [1], [0, 0, 1, 1], [], []>} : vector<32x32xf32>, vector<32x12xf32>, vector<32x12xf32> -> vector<32x12xf32>
    %24 = vector.extract_strided_slice %23 {offsets = [0, 0], sizes = [8, 3], strides = [1, 1]} : vector<32x12xf32> to vector<8x3xf32>
    %25 = vector.extract_strided_slice %23 {offsets = [8, 3], sizes = [8, 3], strides = [1, 1]} : vector<32x12xf32> to vector<8x3xf32>
    %26 = vector.extract_strided_slice %23 {offsets = [16, 6], sizes = [8, 3], strides = [1, 1]} : vector<32x12xf32> to vector<8x3xf32>
    %27 = vector.extract_strided_slice %23 {offsets = [24, 9], sizes = [8, 3], strides = [1, 1]} : vector<32x12xf32> to vector<8x3xf32>
    %28 = tpu.concatenate %24, %25, %26, %27 in 1 : vector<8x3xf32>, vector<8x3xf32>, vector<8x3xf32>, vector<8x3xf32> -> vector<8x12xf32>
    %c0_17 = arith.constant 0 : index
    %c0_18 = arith.constant 0 : index
    %29 = vector.load %arg8[%c0_17, %c0_18] : memref<1x12xf32, #tpu.memory_space<vmem>>, vector<1x12xf32>
    %30 = vector.broadcast %29 : vector<1x12xf32> to vector<8x12xf32>
    %31 = arith.addf %28, %30 : vector<8x12xf32>
    %c0_19 = arith.constant 0 : index
    %c0_20 = arith.constant 0 : index
    %32 = vector.load %arg9[%c0_19, %c0_20] : memref<8x12xf32, #tpu.memory_space<vmem>>, vector<8x12xf32>
    tpu.vector_store %arg9[%c0_19, %c0_20], %31 {strides = array<i32>} : memref<8x12xf32, #tpu.memory_space<vmem>>, vector<8x12xf32>,
    return
  }
  func.func @transform_0(%arg0: i32) -> (i32, i32) {
    %c0_i32 = arith.constant 0 : i32
    %c0_i32_0 = arith.constant 0 : i32
    return %arg0, %c0_i32 : i32, i32
  }
  func.func @transform_1(%arg0: i32) -> (i32, i32) {
    %c0_i32 = arith.constant 0 : i32
    %c0_i32_0 = arith.constant 0 : i32
    %c0_i32_1 = arith.constant 0 : i32
    return %c0_i32, %c0_i32_0 : i32, i32
  }
  func.func @transform_2(%arg0: i32) -> (i32, i32) {
    %c0_i32 = arith.constant 0 : i32
    %c0_i32_0 = arith.constant 0 : i32
    %c0_i32_1 = arith.constant 0 : i32
    return %c0_i32, %c0_i32_0 : i32, i32
  }
  func.func @transform_3(%arg0: i32) -> (i32, i32) {
    %c0_i32 = arith.constant 0 : i32
    %c0_i32_0 = arith.constant 0 : i32
    %c0_i32_1 = arith.constant 0 : i32
    return %c0_i32, %c0_i32_0 : i32, i32
  }
  func.func @transform_4(%arg0: i32) -> (i32, i32) {
    %c0_i32 = arith.constant 0 : i32
    %c0_i32_0 = arith.constant 0 : i32
    %c0_i32_1 = arith.constant 0 : i32
    return %c0_i32, %c0_i32_0 : i32, i32
  }
  func.func @transform_5(%arg0: i32) -> (i32, i32) {
    %c0_i32 = arith.constant 0 : i32
    %c0_i32_0 = arith.constant 0 : i32
    %c0_i32_1 = arith.constant 0 : i32
    return %c0_i32, %c0_i32_0 : i32, i32
  }
  func.func @transform_6(%arg0: i32) -> (i32, i32) {
    %c0_i32 = arith.constant 0 : i32
    %c0_i32_0 = arith.constant 0 : i32
    %c0_i32_1 = arith.constant 0 : i32
    return %c0_i32, %c0_i32_0 : i32, i32
  }
  func.func @transform_7(%arg0: i32) -> (i32, i32) {
    %c0_i32 = arith.constant 0 : i32
    %c0_i32_0 = arith.constant 0 : i32
    %c0_i32_1 = arith.constant 0 : i32
    return %c0_i32, %c0_i32_0 : i32, i32
  }
  func.func @transform_8(%arg0: i32) -> (i32, i32) {
    %c0_i32 = arith.constant 0 : i32
    %c0_i32_0 = arith.constant 0 : i32
    return %arg0, %c0_i32 : i32, i32
  }
}

</mosaic_0001>

<bundles_post_ra>
// kernel: tpu_custom_call.1
= control target key start
LH: loop header
LB: loop body
LE: loop exit
PB: predicated region body
PF: predicated region fallthrough
CT: control target
= control target key end

     0   :  { %13 = vsyncpa [#allocation3], 0  ;;  %s471_s0 = inlined_call_operand.hbm [shape: f32[8,14], index: 0, kind: input, shape index: {}]   ;;  %s472_s1 = inlined_call_operand.hbm [shape: f32[4,14], index: 1, kind: input, shape index: {}]   ;;  %s473_s2 = inlined_call_operand.vmem [shape: f32[14,32], index: 2, kind: input, shape index: {}]   ;;  %s474_s3 = inlined_call_operand.vmem [shape: f32[1,32], index: 3, kind: input, shape index: {}]   ;;  %s475_s4 = inlined_call_operand.vmem [shape: f32[32,32], index: 4, kind: input, shape index: {}]   ;;  %s476_s5 = inlined_call_operand.vmem [shape: f32[1,32], index: 5, kind: input, shape index: {}]   ;;  %s477_s6 = inlined_call_operand.vmem [shape: f32[32,12], index: 6, kind: input, shape index: {}]   ;;  %s478_s7 = inlined_call_operand.vmem [shape: f32[1,12], index: 7, kind: input, shape index: {}]   ;;  %s479_s8 = inlined_call_operand.hbm [shape: f32[8,12], index: 8, kind: output, shape index: {}]  }
   0x1   :  { %14 = vsyncpa [#allocation6], 0 }
   0x2   :  { %15 = vsyncpa [#allocation4], 0  ;;  %s21_s29 = sshll.u32 %s471_s0, 4  ;;  %s367_s30 = smov [#allocation2]   ;;  %s22_s29 = int_to_ptr.hbm [resolvable:$true] %s21_s29 }
   0x3   :  { %s23_s9 = sshll.u32 %s367_s30, 4  ;;  %s32_s12 = sshll.u32 %s472_s1, 4  ;;  %s24_s9 = int_to_ptr.vmem [resolvable:$true] %s23_s9  ;;  %s33_s12 = int_to_ptr.hbm [resolvable:$true] %s32_s12 }
   0x4   :  { %26 = dma.hbm_to_vmem [thread:$0]  %s22_s29, 128, %s24_s9, [#allocation3]  }
   0x5   :  { %s368_s13 = smov [#allocation5]  }
   0x6   :  { %s34_s14 = sshll.u32 %s368_s13, 4  ;;  %s35_s14 = int_to_ptr.vmem [resolvable:$true] %s34_s14 }
   0x7   :  { %37 = dma.hbm_to_vmem [thread:$0]  %s33_s12, 64, %s35_s14, [#allocation6]  }
   0x8   :  { %361 = dma.done.wait [#allocation3], 128  }
   0x9   :  { %362 = vsyncadd [#allocation3], 4294967168 }
   0xa   :  { %363 = dma.done.wait [#allocation6], 64  }
   0xb   :  { %364 = vsyncadd [#allocation6], 4294967232  ;;  %vm95_vm0 = vcmask 1045504   ;;  %v77_v0 = vld [vmem:[%s473_s2 + $0x8] sm:$0x3f]  ;;  %v76_v1 = vld [vmem:[%s473_s2] sm:$0xff] }
   0xc   :  { %v58_v2 = vld [vmem:[#allocation2] sm:$0xff]  ;;  %262 = vmatpush.msk.msra.mxu0 %vm95_vm0, %v77_v0  ;;  %v59_v3 = vld [vmem:[#allocation5] sm:$0xf]  ;;  %v135_v4 = vld [vmem:[%s475_s4 + $0x18] sm:$0xff]  ;;  %vm82_vm1 = vcmask 113664   ;;  %vm140_vm2 = vcmask 261120  }
   0xd   :  { %v64_v5 = vperm.slane %v59_v3, 0  ;;  %v61_v6 = vrot.slane %v59_v3, 1  ;;  %165 = vmatpush.msra.mxu1 %v135_v4  ;;  %275 = vmatpush.msra.mxu3 %v135_v4  ;;  %v62_v10 = vrot.slane %v59_v3, 2  ;;  %v63_v13 = vrot.slane %v59_v3, 3  ;;  %v134_v16 = vld [vmem:[%s475_s4 + $0x10] sm:$0xff]  ;;  %v133_v17 = vld [vmem:[%s475_s4 + $0x8] sm:$0xff] }
   0xe   :  { %114 = vmatpush.msra.mxu0 %v76_v1  ;;  %v132_v18 = vld [vmem:[%s475_s4] sm:$0xff]  ;;  %v189_v20 = vld [vmem:[%s477_s6 + $0x18] sm:$0xff]  ;;  %v188_v33 = vld [vmem:[%s477_s6 + $0x10] sm:$0xff]  ;;  %vm231_vm3 = vcmask 23552   ;;  %vm233_vm4 = vcmask 48128   ;;  %vm235_vm5 = vcmask 72704  }
   0xf   :  { %v72_v7 = vmul.f32 %v64_v5, %v58_v2  ;;  %v65_v8 = vperm.slane %v61_v6, 0  ;;  %v66_v11 = vperm.slane %v62_v10, 0  ;;  %v67_v14 = vperm.slane %v63_v13, 0  ;;  %166 = vmatpush.msra.mxu1 %v134_v16  ;;  %276 = vmatpush.msra.mxu3 %v134_v16  ;;  %v286_v19 = vld [vmem:[%s474_s3] ss:$0 sm:$0xff]  ;;  %v187_v34 = vld [vmem:[%s477_s6 + $0x8] sm:$0xff] }
  0x10   :  { %279 = vmatpush.msra.mxu2 %v189_v20  ;;  %v186_v35 = vld [vmem:[%s477_s6] sm:$0xff]  ;;  %s369_s12 = smov [#allocation7]   ;;  %s251_s15 = sshll.u32 %s479_s8, 4  ;;  %vm242_vm6 = vcmask 97280   ;;  %s252_s15 = int_to_ptr.hbm [resolvable:$true] %s251_s15 }
  0x11   :  { %263 = vmatmul.msk.f32.vlgmr.msra.gmra.mxu0 %vm82_vm1, %v72_v7  ;;  %v73_v9 = vmul.f32 %v65_v8, %v58_v2  ;;  %v74_v12 = vmul.f32 %v66_v11, %v58_v2  ;;  %v75_v15 = vmul.f32 %v67_v14, %v58_v2  ;;  %167 = vmatpush.msra.mxu1 %v133_v17  ;;  %v287_v36 = vld [vmem:[%s476_s5] ss:$0 sm:$0xff]  ;;  %s249_s13 = sshll.u32 %s369_s12, 4  ;;  %s250_s13 = int_to_ptr.vmem [resolvable:$true] %s249_s13 }
  0x12   :  { %277 = vmatpush.msra.mxu3 %v133_v17  ;;  %280 = vmatpush.msra.mxu2 %v188_v33  ;;  %v288_v52 = vld [vmem:[%s478_s7] ss:$0 sm:$0xff] }
  0x13   :  { %168 = vmatpush.msra.mxu1 %v132_v18 }
  0x14   :  { %278 = vmatpush.msra.mxu3 %v132_v18  ;;  %281 = vmatpush.msra.mxu2 %v187_v34 }
  0x15   :  { %214 = vmatpush.msrb.mxu1 %v189_v20 }
  0x16   :  { %282 = vmatpush.msra.mxu2 %v186_v35 }
  0x17   :  { %215 = vmatpush.msrb.mxu1 %v188_v33 }
  0x19   :  { %264 = vmatmul.msk.f32.gmra.mxu0 %vm82_vm1, %v73_v9  ;;  %216 = vmatpush.msrb.mxu1 %v187_v34 }
  0x1b   :  { %217 = vmatpush.msrb.mxu1 %v186_v35 }
  0x21   :  { %265 = vmatmul.msk.f32.gmra.mxu0 %vm82_vm1, %v74_v12 }
  0x29   :  { %266 = vmatmul.msk.f32.gmra.mxu0 %vm82_vm1, %v75_v15 }
  0x8e   :  { %v116_v21 = vpop.f32.mrf.mxu0 }
  0x8f   :  { %v117_v22 = vadd.f32 %v286_v19, %v116_v21 }
  0x91   :  { %v128_v23 = vmax.f32 %v117_v22, 0.0 }
  0x93   :  { %267 = vmatmul.msk.f32.vlgmr.msra.gmra.mxu1 %vm140_vm2, %v128_v23 }
  0x96   :  { %v119_v24 = vpop.f32.mrf.mxu0 }
  0x97   :  { %v120_v25 = vadd.f32 %v286_v19, %v119_v24 }
  0x99   :  { %v129_v26 = vmax.f32 %v120_v25, 0.0 }
  0x9b   :  { %268 = vmatmul.msk.f32.vlgmr.msra.gmra.mxu3 %vm140_vm2, %v129_v26 }
  0x9e   :  { %v122_v27 = vpop.f32.mrf.mxu0 }
  0x9f   :  { %v123_v28 = vadd.f32 %v286_v19, %v122_v27 }
  0xa1   :  { %v130_v29 = vmax.f32 %v123_v28, 0.0 }
  0xa3   :  { %269 = vmatmul.msk.f32.gmra.mxu3 %vm140_vm2, %v130_v29 }
  0xa6   :  { %v125_v30 = vpop.f32.mrf.mxu0 }
  0xa7   :  { %v126_v31 = vadd.f32 %v286_v19, %v125_v30 }
  0xa9   :  { %v131_v32 = vmax.f32 %v126_v31, 0.0 }
  0xab   :  { %270 = vmatmul.msk.f32.gmra.mxu3 %vm140_vm2, %v131_v32 }
 0x110   :  { %v170_v37 = vpop.f32.mrf.mxu1 }
 0x111   :  { %v171_v38 = vadd.f32 %v287_v36, %v170_v37 }
 0x113   :  { %v182_v39 = vmax.f32 %v171_v38, 0.0 }
 0x115   :  { %271 = vmatmul.msk.f32.vlgmr.msrb.gmra.mxu1 %vm140_vm2, %v182_v39 }
 0x11e   :  { %v173_v40 = vpop.f32.mrf.mxu3 }
 0x11f   :  { %v174_v41 = vadd.f32 %v287_v36, %v173_v40 }
 0x121   :  { %v183_v42 = vmax.f32 %v174_v41, 0.0 }
 0x123   :  { %272 = vmatmul.msk.f32.vlgmr.msra.gmra.mxu2 %vm140_vm2, %v183_v42 }
 0x126   :  { %v176_v43 = vpop.f32.mrf.mxu3 }
 0x127   :  { %v177_v44 = vadd.f32 %v287_v36, %v176_v43 }
 0x129   :  { %v184_v45 = vmax.f32 %v177_v44, 0.0 }
 0x12b   :  { %273 = vmatmul.msk.f32.gmra.mxu2 %vm140_vm2, %v184_v45 }
 0x12e   :  { %v179_v46 = vpop.f32.mrf.mxu3 }
 0x12f   :  { %v180_v47 = vadd.f32 %v287_v36, %v179_v46 }
 0x131   :  { %v185_v48 = vmax.f32 %v180_v47, 0.0 }
 0x133   :  { %274 = vmatmul.msk.f32.gmra.mxu2 %vm140_vm2, %v185_v48 }
 0x192   :  { %v219_v51 = vpop.f32.mrf.mxu1 }
 0x1a6   :  { %v222_v49 = vpop.f32.mrf.mxu2 }
 0x1a7   :  { %v232_v53 = vsel %vm231_vm3, %v219_v51, %v222_v49 }
 0x1ae   :  { %v225_v50 = vpop.f32.mrf.mxu2 }
 0x1af   :  { %v234_v54 = vsel %vm233_vm4, %v232_v53, %v225_v50 }
 0x1b6   :  { %v228_v55 = vpop.f32.mrf.mxu2 }
 0x1b7   :  { %v236_v56 = vsel %vm235_vm5, %v234_v54, %v228_v55 }
 0x1b8   :  { %v241_v57 = vadd.f32 %v288_v52, %v236_v56 }
 0x1ba   :  { %243 = vst.msk [vmem:[#allocation7] sm:$0xff] %vm242_vm6, %v241_v57 }
 0x1bb   :  { %254 = dma.vmem_to_hbm [thread:$0]  %s250_s13, 128, %s252_s15, [#allocation4]  }
 0x1bc   :  { %365 = dma.done.wait [#allocation4], 128  }
 0x1bd   :  { %366 = vsyncadd [#allocation4], 4294967168 }
 0x1be   :  { %259 = vsyncpa [#allocation3], 1 }
 0x1bf   :  { %260 = vsyncpa [#allocation6], 1 }
 0x1c0   :  { %261 = vsyncpa [#allocation4], 1 }

</bundles_post_ra>
